<compile_context>
chip_gen: v6e
topology: v6e:2x2x1
jax: 0.10.0
libtpu: 0.0.40
codegen_flags: <defaults>
</compile_context>

<pallas_src>
import math

import jax
import jax.numpy as jnp
from jax import lax
from jax.experimental import pallas as pl
from jax.experimental.pallas import tpu as pltpu

HDIM = 32          # d_model = d_k = d_v = 32, n_head = 1
FEAT = 1000        # resnet18 output features
NCLASS = 4
OUT_PAD = 128      # lane-dense output slab width
LN_EPS = 1e-5
MiB = 1024 * 1024


def _round_up(x, m):
    return (x + m - 1) // m * m


def _tiling(chw, tk_req):
    """K-tile / padded-K policy, shared by prepare() and forward()."""
    k128 = _round_up(chw, 128)
    if k128 <= tk_req:
        return k128, k128            # single K step -> weight stays VMEM-resident
    tk = _round_up(tk_req, 128)
    return tk, _round_up(k128, tk)


def _vmem_cap_bytes():
    try:
        return int(pltpu.get_tpu_info().vmem_capacity_bytes)
    except Exception:
        return 64 * MiB              # conservative (v7x physical VMEM)


def _classifier_kernel(
    xf_ref,            # (tb, tk)        bf16  flattened image tile (streamed)
    wt_ref,            # (HDIM, tk)      bf16  folded weight, lane-dense transposed
    b_ref,             # (1, HDIM)       f32   folded bias
    gamma_ref, beta_ref,   # (1, HDIM)   f32   LayerNorm affine
    w2_ref, b2_ref,    # (HDIM, 128), (1, 128)  fc2 (zero-padded past NCLASS)
    out_ref,           # (tb, 128)       f32   logits slab
    acc_ref,           # (tb, HDIM)      f32   scratch accumulator (persists over K)
):
    f32 = jnp.float32
    k = pl.program_id(1)

    @pl.when(k == 0)
    def _():
        acc_ref[...] = jnp.zeros_like(acc_ref)

    # Streamed K reduction on the MXU; both operands contract on their last
    # axis (weight is stored transposed / lane-dense), f32 accumulation.
    acc_ref[...] += lax.dot_general(
        xf_ref[...], wt_ref[...],
        dimension_numbers=(((1,), (1,)), ((), ())),
        preferred_element_type=f32,
    )

    # Epilogue on the last K step: LayerNorm + fc2 (attention path already
    # folded into the streamed weight; softmax==1 since seq_len==1).
    @pl.when(k == pl.num_programs(1) - 1)
    def _():
        y = acc_ref[...] + b_ref[...]                                 # (tb, 32)
        mu = jnp.mean(y, axis=-1, keepdims=True)
        var = jnp.mean((y - mu) * (y - mu), axis=-1, keepdims=True)
        y_ln = (y - mu) * lax.rsqrt(var + jnp.asarray(LN_EPS, f32))
        y_ln = y_ln * gamma_ref[...] + beta_ref[...]
        logits = jnp.dot(y_ln, w2_ref[...], preferred_element_type=f32) + b2_ref[...]
        out_ref[...] = logits.astype(out_ref.dtype)


def make_params(key, chw):
    """Deterministic parameter init mirroring the module's __init__ shapes.

    Weights are stored pre-transposed, i.e. (in_features, out_features), so
    compute is y = x @ W + b (equivalent to torch's x @ W.T + b).
    """
    ks = jax.random.split(key, 10)
    f32 = jnp.float32

    def normal(k, shape, std):
        return (jax.random.normal(k, shape, dtype=f32) * std).astype(f32)

    return dict(
        wr=normal(ks[0], (chw, FEAT), 1.0 / math.sqrt(chw)),   # linear backbone stand-in
        br=jnp.zeros((1, FEAT), f32),
        w1=normal(ks[1], (FEAT, HDIM), 1.0 / math.sqrt(FEAT)),
        b1=jnp.zeros((1, HDIM), f32),
        # w_qs / w_ks exist in the module but are dead for seq_len 1.
        wq=normal(ks[2], (HDIM, HDIM), math.sqrt(2.0 / (HDIM + HDIM))),
        wk=normal(ks[3], (HDIM, HDIM), math.sqrt(2.0 / (HDIM + HDIM))),
        wv=normal(ks[4], (HDIM, HDIM), math.sqrt(2.0 / (HDIM + HDIM))),
        wfc=normal(ks[5], (HDIM, HDIM), math.sqrt(2.0 / (HDIM + HDIM))),
        bfc=jnp.zeros((1, HDIM), f32),
        gamma=jnp.ones((1, HDIM), f32),
        beta=jnp.zeros((1, HDIM), f32),
        w2=normal(ks[6], (HDIM, NCLASS), 1.0 / math.sqrt(HDIM)),
        b2=jnp.zeros((1, NCLASS), f32),
    )


def prepare_folded_params(params, chw, *, tk=4096):
    """One-time (per weight set) fold + cast + pad.  Call once and cache."""
    f32 = jnp.float32
    tk, k_pad = _tiling(chw, tk)

    # backbone(stand-in) o fc1   (exact: both linear)
    w1f = jnp.dot(params["wr"], params["w1"], preferred_element_type=f32)            # (CHW, 32)
    b1f = jnp.dot(params["br"], params["w1"], preferred_element_type=f32) + params["b1"]

    # seq_len==1 attention: softmax == 1, so attn_out == v and the whole
    # value/output/residual path is linear:  y = x1 @ (wv@wfc + I) + bfc
    m = jnp.dot(params["wv"], params["wfc"], preferred_element_type=f32) + jnp.eye(HDIM, dtype=f32)
    w_total = jnp.dot(w1f, m, preferred_element_type=f32)                  # (CHW, 32)
    b_total = jnp.dot(b1f, m, preferred_element_type=f32) + params["bfc"]  # (1, 32)

    # Stream layout: transposed (HDIM, K) so the long axis sits on lanes.
    wt = w_total.T.astype(jnp.bfloat16)
    if k_pad != chw:
        wt = jnp.pad(wt, ((0, 0), (0, k_pad - chw)))

    # fc2 padded to a lane-dense (32, 128) / (1, 128) slab (zero columns past 4).
    w2p = jnp.zeros((HDIM, OUT_PAD), f32).at[:, :NCLASS].set(params["w2"])
    b2p = jnp.zeros((1, OUT_PAD), f32).at[:, :NCLASS].set(params["b2"])

    return dict(wt=wt, b=b_total, gamma=params["gamma"], beta=params["beta"],
                w2=w2p, b2=b2p, chw=chw, tk=tk, k_pad=k_pad)


def resnet18_m_classify_att_forward(x_nchw, folded, *, tb=256):
    """Forward pass. x_nchw: (B, C, H, W) float32 -> logits (B, 4)."""
    B = x_nchw.shape[0]
    xf = x_nchw.reshape(B, -1).astype(jnp.bfloat16)       # cast BEFORE padding
    chw, tk, k_pad = folded["chw"], folded["tk"], folded["k_pad"]
    assert xf.shape[1] == chw, (xf.shape, chw)

    # Batch tiling: multiple of 8, no gratuitous padding for small B, and at
    # least 2 tiles on the "parallel" axis when possible (v7x has 2 TCs).
    tb = min(tb, _round_up(B, 8))
    b_pad = _round_up(B, tb)
    if b_pad // tb < 2 and b_pad >= 16 and b_pad % 16 == 0:
        tb = b_pad // 2

    if b_pad != B or k_pad != chw:
        xf = jnp.pad(xf, ((0, b_pad - B), (0, k_pad - chw)))

    grid = (b_pad // tb, k_pad // tk)

    # VMEM budget: xf double-buffer + weight blocks + scratch + output + consts.
    needed = (2 * tb * tk * 2 + 2 * HDIM * tk * 2
              + tb * 128 * 4 + 2 * tb * OUT_PAD * 4 + 512 * 1024)
    cap = _vmem_cap_bytes()
    vmem_limit = max(min(max(2 * needed, 32 * MiB), (3 * cap) // 4),
                     needed + 1 * MiB)

    small = lambda shape: pl.BlockSpec(shape, lambda i, k: (0, 0))
    grid_spec = pltpu.PrefetchScalarGridSpec(
        num_scalar_prefetch=0,
        grid=grid,
        in_specs=[
            pl.BlockSpec((tb, tk), lambda i, k: (i, k)),      # xf (streamed)
            pl.BlockSpec((HDIM, tk), lambda i, k: (0, k)),    # folded weight (resident if nk==1)
            small((1, HDIM)),                                 # b_total
            small((1, HDIM)),                                 # gamma
            small((1, HDIM)),                                 # beta
            small((HDIM, OUT_PAD)),                           # fc2 weight (lane-padded)
            small((1, OUT_PAD)),                              # fc2 bias (lane-padded)
        ],
        out_specs=pl.BlockSpec((tb, OUT_PAD), lambda i, k: (i, 0)),
        scratch_shapes=[pltpu.VMEM((tb, HDIM), jnp.float32)],
    )

    out = pl.pallas_call(
        _classifier_kernel,
        out_shape=jax.ShapeDtypeStruct((b_pad, OUT_PAD), jnp.float32),
        grid_spec=grid_spec,
        compiler_params=pltpu.CompilerParams(
            dimension_semantics=("parallel", "arbitrary"),
            vmem_limit_bytes=int(vmem_limit),
        ),
    )(xf, folded["wt"], folded["b"], folded["gamma"], folded["beta"],
      folded["w2"], folded["b2"])
    return out[:B, :NCLASS]


def _reference(x_nchw, folded):
    """Pure-JAX reference using the same bf16-cast streamed operands."""
    B = x_nchw.shape[0]
    xf = x_nchw.reshape(B, -1).astype(jnp.bfloat16).astype(jnp.float32)
    wt = folded["wt"][:, :folded["chw"]].astype(jnp.float32)       # (32, CHW)
    y = xf @ wt.T + folded["b"]
    mu = y.mean(-1, keepdims=True)
    var = ((y - mu) ** 2).mean(-1, keepdims=True)
    y_ln = (y - mu) / jnp.sqrt(var + LN_EPS) * folded["gamma"] + folded["beta"]
    return y_ln @ folded["w2"][:, :NCLASS] + folded["b2"][:, :NCLASS]


if __name__ == "__main__":
    key = jax.random.PRNGKey(0)
    k_x, k_p = jax.random.split(key)

    B, C, H, W = 2, 4, 16, 16
    x = jax.random.normal(k_x, (B, C, H, W), dtype=jnp.float32)
    params = make_params(k_p, C * H * W)

    # One-time fold (cached across forward calls).
    folded = prepare_folded_params(params, C * H * W)

    logits = resnet18_m_classify_att_forward(x, folded)
    jax.block_until_ready(logits)
    assert logits.shape == (B, NCLASS), logits.shape

    ref = _reference(x, folded)
    assert jnp.allclose(logits, ref, atol=2e-2, rtol=2e-2), (logits, ref)
    print("KERNEL_OK")
</pallas_src>

<mosaic_0001>
module attributes {stable_mosaic.version = 11 : i64} {
  func.func @_classifier_kernel(%arg0: i32, %arg1: i32, %arg2: memref<8x1024xbf16, #tpu.memory_space<vmem>>, %arg3: memref<32x1024xbf16, #tpu.memory_space<vmem>>, %arg4: memref<1x32xf32, #tpu.memory_space<vmem>>, %arg5: memref<1x32xf32, #tpu.memory_space<vmem>>, %arg6: memref<1x32xf32, #tpu.memory_space<vmem>>, %arg7: memref<32x128xf32, #tpu.memory_space<vmem>>, %arg8: memref<1x128xf32, #tpu.memory_space<vmem>>, %arg9: memref<8x128xf32, #tpu.memory_space<vmem>>, %arg10: memref<8x32xf32, #tpu.memory_space<vmem>>) attributes {dimension_semantics = [#tpu.dimension_semantics<parallel>, #tpu.dimension_semantics<arbitrary>], iteration_bounds = array<i64: 1, 1>, scalar_prefetch = 0 : i64, scratch_operands = 1 : i64, tpu.core_type = #tpu.core_type<tc>, window_params = [{transform_indices = @transform_0, window_bounds = array<i64: 8, 1024>}, {transform_indices = @transform_1, window_bounds = array<i64: 32, 1024>}, {pipeline_mode = #tpu.pipeline_mode<synchronous>, transform_indices = @transform_2, window_bounds = array<i64: 1, 32>}, {pipeline_mode = #tpu.pipeline_mode<synchronous>, transform_indices = @transform_3, window_bounds = array<i64: 1, 32>}, {pipeline_mode = #tpu.pipeline_mode<synchronous>, transform_indices = @transform_4, window_bounds = array<i64: 1, 32>}, {pipeline_mode = #tpu.pipeline_mode<synchronous>, transform_indices = @transform_5, window_bounds = array<i64: 32, 128>}, {pipeline_mode = #tpu.pipeline_mode<synchronous>, transform_indices = @transform_6, window_bounds = array<i64: 1, 128>}, {transform_indices = @transform_7, window_bounds = array<i64: 8, 128>}]} {
    %c0_i32 = arith.constant 0 : i32
    %0 = arith.cmpi eq, %arg1, %c0_i32 : i32
    %1 = arith.extui %0 : i1 to i32
    %c0_i32_0 = arith.constant 0 : i32
    %2 = arith.cmpi ne, %1, %c0_i32_0 : i32
    scf.if %2 {
      %cst_10 = arith.constant 0.000000e+00 : f32
      %12 = vector.broadcast %cst_10 : f32 to vector<8x32xf32>
      %c0_11 = arith.constant 0 : index
      %c0_12 = arith.constant 0 : index
      %13 = vector.load %arg10[%c0_11, %c0_12] : memref<8x32xf32, #tpu.memory_space<vmem>>, vector<8x32xf32>
      tpu.vector_store %arg10[%c0_11, %c0_12], %12 {strides = array<i32>} : memref<8x32xf32, #tpu.memory_space<vmem>>, vector<8x32xf32>,
    } else {
    }
    %c0 = arith.constant 0 : index
    %c0_1 = arith.constant 0 : index
    %3 = vector.load %arg10[%c0, %c0_1] : memref<8x32xf32, #tpu.memory_space<vmem>>, vector<8x32xf32>
    %c0_2 = arith.constant 0 : index
    %c0_3 = arith.constant 0 : index
    %4 = vector.load %arg2[%c0_2, %c0_3] : memref<8x1024xbf16, #tpu.memory_space<vmem>>, vector<8x1024xbf16>
    %c0_4 = arith.constant 0 : index
    %c0_5 = arith.constant 0 : index
    %5 = vector.load %arg3[%c0_4, %c0_5] : memref<32x1024xbf16, #tpu.memory_space<vmem>>, vector<32x1024xbf16>
    %cst = arith.constant dense<0.000000e+00> : vector<8x32xf32>
    %6 = tpu.matmul %4, %5, %cst {dimension_numbers = #tpu.dot_dimension_numbers<[1], [1], [0], [0], [0, 0, 1, 0], [], []>} : vector<8x1024xbf16>, vector<32x1024xbf16>, vector<8x32xf32> -> vector<8x32xf32>
    %7 = arith.addf %3, %6 : vector<8x32xf32>
    %c0_6 = arith.constant 0 : index
    %c0_7 = arith.constant 0 : index
    %8 = vector.load %arg10[%c0_6, %c0_7] : memref<8x32xf32, #tpu.memory_space<vmem>>, vector<8x32xf32>
    tpu.vector_store %arg10[%c0_6, %c0_7], %7 {strides = array<i32>} : memref<8x32xf32, #tpu.memory_space<vmem>>, vector<8x32xf32>,
    %c0_i32_8 = arith.constant 0 : i32
    %9 = arith.cmpi eq, %arg1, %c0_i32_8 : i32
    %10 = arith.extui %9 : i1 to i32
    %c0_i32_9 = arith.constant 0 : i32
    %11 = arith.cmpi ne, %10, %c0_i32_9 : i32
    scf.if %11 {
      %c0_10 = arith.constant 0 : index
      %c0_11 = arith.constant 0 : index
      %12 = vector.load %arg10[%c0_10, %c0_11] : memref<8x32xf32, #tpu.memory_space<vmem>>, vector<8x32xf32>
      %c0_12 = arith.constant 0 : index
      %c0_13 = arith.constant 0 : index
      %13 = vector.load %arg4[%c0_12, %c0_13] : memref<1x32xf32, #tpu.memory_space<vmem>>, vector<1x32xf32>
      %14 = vector.broadcast %13 : vector<1x32xf32> to vector<8x32xf32>
      %15 = arith.addf %12, %14 : vector<8x32xf32>
      %cst_14 = arith.constant dense<0.000000e+00> : vector<8xf32>
      %16 = vector.multi_reduction <add>, %15, %cst_14 [1] : vector<8x32xf32> to vector<8xf32>
      %17 = vector.shape_cast %16 : vector<8xf32> to vector<8x1xf32>
      %cst_15 = arith.constant 3.200000e+01 : f32
      %18 = vector.broadcast %cst_15 : f32 to vector<8x1xf32>
      %19 = arith.divf %17, %18 : vector<8x1xf32>
      %20 = vector.broadcast %19 : vector<8x1xf32> to vector<8x32xf32>
      %21 = arith.subf %15, %20 : vector<8x32xf32>
      %22 = vector.broadcast %19 : vector<8x1xf32> to vector<8x32xf32>
      %23 = arith.subf %15, %22 : vector<8x32xf32>
      %24 = arith.mulf %21, %23 : vector<8x32xf32>
      %cst_16 = arith.constant dense<0.000000e+00> : vector<8xf32>
      %25 = vector.multi_reduction <add>, %24, %cst_16 [1] : vector<8x32xf32> to vector<8xf32>
      %26 = vector.shape_cast %25 : vector<8xf32> to vector<8x1xf32>
      %cst_17 = arith.constant 3.200000e+01 : f32
      %27 = vector.broadcast %cst_17 : f32 to vector<8x1xf32>
      %28 = arith.divf %26, %27 : vector<8x1xf32>
      %29 = vector.broadcast %19 : vector<8x1xf32> to vector<8x32xf32>
      %30 = arith.subf %15, %29 : vector<8x32xf32>
      %cst_18 = arith.constant 9.99999974E-6 : f32
      %31 = vector.broadcast %cst_18 : f32 to vector<8x1xf32>
      %32 = arith.addf %28, %31 : vector<8x1xf32>
      %33 = math.rsqrt %32 : vector<8x1xf32>
      %34 = vector.broadcast %33 : vector<8x1xf32> to vector<8x32xf32>
      %35 = arith.mulf %30, %34 : vector<8x32xf32>
      %c0_19 = arith.constant 0 : index
      %c0_20 = arith.constant 0 : index
      %36 = vector.load %arg5[%c0_19, %c0_20] : memref<1x32xf32, #tpu.memory_space<vmem>>, vector<1x32xf32>
      %37 = vector.broadcast %36 : vector<1x32xf32> to vector<8x32xf32>
      %38 = arith.mulf %35, %37 : vector<8x32xf32>
      %c0_21 = arith.constant 0 : index
      %c0_22 = arith.constant 0 : index
      %39 = vector.load %arg6[%c0_21, %c0_22] : memref<1x32xf32, #tpu.memory_space<vmem>>, vector<1x32xf32>
      %40 = vector.broadcast %39 : vector<1x32xf32> to vector<8x32xf32>
      %41 = arith.addf %38, %40 : vector<8x32xf32>
      %c0_23 = arith.constant 0 : index
      %c0_24 = arith.constant 0 : index
      %42 = vector.load %arg7[%c0_23, %c0_24] : memref<32x128xf32, #tpu.memory_space<vmem>>, vector<32x128xf32>
      %cst_25 = arith.constant dense<0.000000e+00> : vector<8x128xf32>
      %43 = tpu.matmul %41, %42, %cst_25 {dimension_numbers = #tpu.dot_dimension_numbers<[1], [0], [0], [1], [0, 0, 1, 1], [], []>} : vector<8x32xf32>, vector<32x128xf32>, vector<8x128xf32> -> vector<8x128xf32>
      %c0_26 = arith.constant 0 : index
      %c0_27 = arith.constant 0 : index
      %44 = vector.load %arg8[%c0_26, %c0_27] : memref<1x128xf32, #tpu.memory_space<vmem>>, vector<1x128xf32>
      %45 = vector.broadcast %44 : vector<1x128xf32> to vector<8x128xf32>
      %46 = arith.addf %43, %45 : vector<8x128xf32>
      %c0_28 = arith.constant 0 : index
      %c0_29 = arith.constant 0 : index
      %47 = vector.load %arg9[%c0_28, %c0_29] : memref<8x128xf32, #tpu.memory_space<vmem>>, vector<8x128xf32>
      tpu.vector_store %arg9[%c0_28, %c0_29], %46 {strides = array<i32>} : memref<8x128xf32, #tpu.memory_space<vmem>>, vector<8x128xf32>,
    } else {
    }
    return
  }
  func.func @transform_0(%arg0: i32, %arg1: i32) -> (i32, i32) {
    %c0_i32 = arith.constant 0 : i32
    return %arg0, %arg1 : i32, i32
  }
  func.func @transform_1(%arg0: i32, %arg1: i32) -> (i32, i32) {
    %c0_i32 = arith.constant 0 : i32
    %c0_i32_0 = arith.constant 0 : i32
    return %c0_i32, %arg1 : i32, i32
  }
  func.func @transform_2(%arg0: i32, %arg1: i32) -> (i32, i32) {
    %c0_i32 = arith.constant 0 : i32
    %c0_i32_0 = arith.constant 0 : i32
    %c0_i32_1 = arith.constant 0 : i32
    return %c0_i32, %c0_i32_0 : i32, i32
  }
  func.func @transform_3(%arg0: i32, %arg1: i32) -> (i32, i32) {
    %c0_i32 = arith.constant 0 : i32
    %c0_i32_0 = arith.constant 0 : i32
    %c0_i32_1 = arith.constant 0 : i32
    return %c0_i32, %c0_i32_0 : i32, i32
  }
  func.func @transform_4(%arg0: i32, %arg1: i32) -> (i32, i32) {
    %c0_i32 = arith.constant 0 : i32
    %c0_i32_0 = arith.constant 0 : i32
    %c0_i32_1 = arith.constant 0 : i32
    return %c0_i32, %c0_i32_0 : i32, i32
  }
  func.func @transform_5(%arg0: i32, %arg1: i32) -> (i32, i32) {
    %c0_i32 = arith.constant 0 : i32
    %c0_i32_0 = arith.constant 0 : i32
    %c0_i32_1 = arith.constant 0 : i32
    return %c0_i32, %c0_i32_0 : i32, i32
  }
  func.func @transform_6(%arg0: i32, %arg1: i32) -> (i32, i32) {
    %c0_i32 = arith.constant 0 : i32
    %c0_i32_0 = arith.constant 0 : i32
    %c0_i32_1 = arith.constant 0 : i32
    return %c0_i32, %c0_i32_0 : i32, i32
  }
  func.func @transform_7(%arg0: i32, %arg1: i32) -> (i32, i32) {
    %c0_i32 = arith.constant 0 : i32
    %c0_i32_0 = arith.constant 0 : i32
    return %arg0, %c0_i32 : i32, i32
  }
}

</mosaic_0001>

<bundles_post_ra>
// kernel: tpu_custom_call.1
= control target key start
LH: loop header
LB: loop body
LE: loop exit
PB: predicated region body
PF: predicated region fallthrough
CT: control target
= control target key end

     0   :  { %12 = vsyncpa [#allocation4], 0  ;;  %s738_s0 = inlined_call_operand.hbm [shape: bf16[8,1024], index: 0, kind: input, shape index: {}]   ;;  %s739_s1 = inlined_call_operand.hbm [shape: bf16[32,1024], index: 1, kind: input, shape index: {}]   ;;  %s740_s2 = inlined_call_operand.vmem [shape: f32[1,32], index: 2, kind: input, shape index: {}]   ;;  %s741_s3 = inlined_call_operand.vmem [shape: f32[1,32], index: 3, kind: input, shape index: {}]   ;;  %s742_s4 = inlined_call_operand.vmem [shape: f32[1,32], index: 4, kind: input, shape index: {}]   ;;  %s743_s5 = inlined_call_operand.hbm [shape: f32[32,128], index: 5, kind: input, shape index: {}]   ;;  %s744_s6 = inlined_call_operand.vmem [shape: f32[1,128], index: 6, kind: input, shape index: {}]   ;;  %s745_s7 = inlined_call_operand.hbm [shape: f32[8,128], index: 7, kind: output, shape index: {}]  }
   0x1   :  { %13 = vsyncpa [#allocation7], 0 }
   0x2   :  { %14 = vsyncpa [#allocation5], 0  ;;  %s659_s24 = smov [#allocation6]  }
   0x3   :  { %s30_s25 = sshll.u32 %s659_s24, 4  ;;  %s31_s25 = int_to_ptr.vmem [resolvable:$true] %s30_s25 }
   0x4   :  { %s581_s26 = scalar_lea.vmem %s31_s25, 2048  ;;  %p586_p1 = scmp.lt.s32.totalorder %s31_s25, %s31_s25 }
   0x5   :  { %p582_p0 = scmp.ne.s32.totalorder %s31_s25, %s581_s26  ;;  %p587_p2 = scmp.lt.s32.totalorder %s581_s26, %s581_s26 }
   0x7   :  { %p588_p3 = por %p587_p2, %p586_p1 }
   0x9   :  { %p589_p4 = pnand %p588_p3, %p582_p0 }
   0xb   :  { %592 = shalt.err (!%p589_p4)
}
   0xc   :  { %s660_s27 = smov 512   ;;  %s661_s28 = smov 32  }
   0xd   :  { %36 = dma.hbm_to_vmem [thread:$0]  %s739_s1, 2048, %s31_s25, [#allocation7], %s660_s27, %s660_s27, %s661_s28  }
   0xe   :  { %s662_s8 = smov [#allocation3]   ;;  %s663_s10 = smov [#allocation8]  }
   0xf   :  { %s21_s9 = sshll.u32 %s662_s8, 4  ;;  %s48_s11 = sshll.u32 %s663_s10, 4  ;;  %s22_s9 = int_to_ptr.vmem [resolvable:$true] %s21_s9  ;;  %s49_s11 = int_to_ptr.vmem [resolvable:$true] %s48_s11 }
  0x10   :  { %s601_s12 = scalar_lea.vmem %s22_s9, 512  ;;  %p606_p6 = scmp.lt.s32.totalorder %s22_s9, %s22_s9 }
  0x11   :  { %p602_p5 = scmp.ne.s32.totalorder %s22_s9, %s601_s12  ;;  %p607_p7 = scmp.lt.s32.totalorder %s601_s12, %s601_s12 }
  0x13   :  { %p608_p8 = por %p607_p7, %p606_p6 }
  0x15   :  { %p609_p9 = pnand %p608_p8, %p602_p5 }
  0x17   :  { %612 = shalt.err (!%p609_p9)
}
  0x18   :  { %24 = dma.hbm_to_vmem [thread:$0]  %s738_s0, 512, %s22_s9, [#allocation4]  }
  0x19   :  { %s621_s15 = scalar_lea.vmem %s49_s11, 512  ;;  %p626_p11 = scmp.lt.s32.totalorder %s49_s11, %s49_s11 }
  0x1a   :  { %p622_p10 = scmp.ne.s32.totalorder %s49_s11, %s621_s15  ;;  %p627_p12 = scmp.lt.s32.totalorder %s621_s15, %s621_s15 }
  0x1c   :  { %p628_p13 = por %p627_p12, %p626_p11 }
  0x1e   :  { %p629_p0 = pnand %p628_p13, %p622_p10 }
  0x20   :  { %632 = shalt.err (!%p629_p0)
}
  0x21   :  { %s664_s1 = smov 128   ;;  %s665_s16 = smov 8  }
  0x22   :  { %54 = dma.hbm_to_vmem [thread:$0]  %s743_s5, 512, %s49_s11, [#allocation7], %s664_s1, %s664_s1, %s665_s16  }
  0x23   :  { %653 = dma.done.wait [#allocation4], 512  }
  0x24   :  { %654 = vsyncadd [#allocation4], 4294966784 }
  0x25   :  { %655 = dma.done.wait [#allocation7], 2560  }
  0x26   :  { %656 = vsyncadd [#allocation7], 4294964736  ;;  %v86_v0 = vld [vmem:[#allocation6 + $0x40] sm:$0xff]  ;;  %v87_v2 = vld [vmem:[#allocation6 + $0x48] sm:$0xff]  ;;  %vm71_vm0 = vcmask 261120   ;;  %v666_v44 = vmov 0.0  }
  0x27   :  { %v90_v1 = vld [vmem:[#allocation6 + $0x60] sm:$0xff]  ;;  %v91_v4 = vld [vmem:[#allocation6 + $0x68] sm:$0xff]  ;;  %v88_v18 = vld [vmem:[#allocation6 + $0x50] sm:$0xff]  ;;  %72 = vst.msk [vmem:[#allocation2] sm:$0xff] %vm71_vm0, %v666_v44  ;;  %vm667_vm1 = vmmov 0   ;;  %s668_s24 = smov [#allocation9]  }
  0x28   :  { %v525_v3 = vcombine.high %v86_v0, %v90_v1  ;;  %v524_v5 = vcombine.low %v86_v0, %v90_v1  ;;  %v78_v6 = vld [vmem:[#allocation6] sm:$0xff]  ;;  %v527_v8 = vcombine.high %v87_v2, %v91_v4  ;;  %v526_v9 = vcombine.low %v87_v2, %v91_v4  ;;  %v79_v11 = vld [vmem:[#allocation6 + $0x8] sm:$0xff]  ;;  %v92_v19 = vld [vmem:[#allocation6 + $0x70] sm:$0xff]  ;;  %s498_s25 = sshll.u32 %s668_s24, 4  ;;  %s499_s25 = int_to_ptr.vmem [resolvable:$true] %s498_s25 }
  0x29   :  { %v82_v7 = vld [vmem:[#allocation6 + $0x20] sm:$0xff]  ;;  %v83_v12 = vld [vmem:[#allocation6 + $0x28] sm:$0xff]  ;;  %v89_v20 = vld [vmem:[#allocation6 + $0x58] sm:$0xff]  ;;  %v529_v24 = vcombine.high %v88_v18, %v92_v19  ;;  %v528_v33 = vcombine.low %v88_v18, %v92_v19  ;;  %p638_p2 = scmp.lt.s32.totalorder %s499_s25, %s499_s25 }
  0x2a   :  { %v517_v10 = vcombine.high %v78_v6, %v82_v7  ;;  %v74_v13 = vld [vmem:[#allocation3] sm:$0xff]  ;;  %214 = vmatprep.subr.bf16.mxu0 %v525_v3  ;;  %v519_v14 = vcombine.high %v79_v11, %v83_v12  ;;  %v75_v16 = vld [vmem:[#allocation3 + $0x8] sm:$0xff]  ;;  %254 = vmatprep.subr.bf16.mxu1 %v527_v8  ;;  %v93_v21 = vld [vmem:[#allocation6 + $0x78] sm:$0xff]  ;;  %v516_v22 = vcombine.low %v78_v6, %v82_v7 }
  0x2b   :  { %v509_v15 = vcombine.high %v74_v13, %v74_v13  ;;  %215 = vmatpush1.bf16.xpose.msra.mxu0 %v524_v5  ;;  %v511_v17 = vcombine.high %v75_v16, %v75_v16  ;;  %255 = vmatpush1.bf16.xpose.msra.mxu1 %v526_v9  ;;  %v518_v23 = vcombine.low %v79_v11, %v83_v12  ;;  %v80_v26 = vld [vmem:[#allocation6 + $0x10] sm:$0xff]  ;;  %v81_v29 = vld [vmem:[#allocation6 + $0x18] sm:$0xff] }
  0x2c   :  { %216 = vmatprep.subr.bf16.mxu0 %v517_v10  ;;  %256 = vmatprep.subr.bf16.mxu1 %v519_v14  ;;  %v531_v25 = vcombine.high %v89_v20, %v93_v21  ;;  %v84_v27 = vld [vmem:[#allocation6 + $0x30] sm:$0xff]  ;;  %v508_v28 = vcombine.low %v74_v13, %v74_v13  ;;  %v85_v30 = vld [vmem:[#allocation6 + $0x38] sm:$0xff]  ;;  %v510_v32 = vcombine.low %v75_v16, %v75_v16  ;;  %v408_v13 = vld [vmem:[#allocation8 + $0x8] sm:$0xff] }
  0x2d   :  { %234 = vmatprep.mubr.bf16.mxu0 %v509_v15  ;;  %274 = vmatprep.mubr.bf16.mxu1 %v511_v17  ;;  %v76_v31 = vld [vmem:[#allocation3 + $0x10] sm:$0xff]  ;;  %v77_v34 = vld [vmem:[#allocation3 + $0x18] sm:$0xff]  ;;  %v530_v35 = vcombine.low %v89_v20, %v93_v21  ;;  %v521_v36 = vcombine.high %v80_v26, %v84_v27  ;;  %v523_v37 = vcombine.high %v81_v29, %v85_v30  ;;  %v407_v14 = vld [vmem:[#allocation8] sm:$0xff] }
  0x2e   :  { %v513_v38 = vcombine.high %v76_v31, %v76_v31  ;;  %v515_v39 = vcombine.high %v77_v34, %v77_v34  ;;  %v520_v40 = vcombine.low %v80_v26, %v84_v27  ;;  %v522_v41 = vcombine.low %v81_v29, %v85_v30  ;;  %v73_v57 = vld [vmem:[#allocation2] sm:$0xff]  ;;  %v409_v12 = vld [vmem:[#allocation8 + $0x10] sm:$0xff] }
  0x2f   :  { %v512_v42 = vcombine.low %v76_v31, %v76_v31  ;;  %v514_v43 = vcombine.low %v77_v34, %v77_v34  ;;  %v532_v2 = vld [vmem:[%s740_s2] ss:$0 sm:$0xff] }
  0x30   :  { %v410_v11 = vld [vmem:[#allocation8 + $0x18] sm:$0xff] }
  0x31   :  { %v533_v19 = vld [vmem:[%s741_s3] ss:$0 sm:$0xff]  ;;  %s633_s3 = scalar_lea.vmem %s499_s25, 128 }
  0x32   :  { %v534_v21 = vld [vmem:[%s742_s4] ss:$0 sm:$0xff]  ;;  %p634_p1 = scmp.ne.s32.totalorder %s499_s25, %s633_s3  ;;  %p639_p3 = scmp.lt.s32.totalorder %s633_s3, %s633_s3 }
  0x33   :  { %217 = vmatpush1.bf16.xpose.msra.mxu0 %v516_v22  ;;  %257 = vmatpush1.bf16.xpose.msra.mxu1 %v518_v23 }
  0x34   :  { %294 = vmatprep.subr.bf16.mxu0 %v529_v24  ;;  %334 = vmatprep.subr.bf16.mxu1 %v531_v25  ;;  %v535_v24 = vld [vmem:[%s744_s6] ss:$0 sm:$0xff]  ;;  %p640_p4 = por %p639_p3, %p638_p2 }
  0x36   :  { %p641_p5 = pnand %p640_p4, %p634_p1 }
  0x3a   :  { %235 = vmatmul.mubr.bf16.vlgmr.msra.gmra.mxu0 %v508_v28  ;;  %275 = vmatmul.mubr.bf16.vlgmr.msra.gmra.mxu1 %v510_v32 }
  0x3b   :  { %295 = vmatpush1.bf16.xpose.msra.mxu0 %v528_v33  ;;  %335 = vmatpush1.bf16.xpose.msra.mxu1 %v530_v35 }
  0x3c   :  { %296 = vmatprep.subr.bf16.mxu0 %v521_v36  ;;  %336 = vmatprep.subr.bf16.mxu1 %v523_v37 }
  0x3d   :  { %314 = vmatprep.mubr.bf16.mxu0 %v513_v38  ;;  %354 = vmatprep.mubr.bf16.mxu1 %v515_v39 }
  0x43   :  { %297 = vmatpush1.bf16.xpose.msra.mxu0 %v520_v40  ;;  %337 = vmatpush1.bf16.xpose.msra.mxu1 %v522_v41 }
  0x44   :  { %542 = vmatprep.subr.mxu0 %v666_v44 }
  0x4a   :  { %315 = vmatmul.mubr.bf16.vlgmr.msra.gmra.mxu0 %v512_v42  ;;  %355 = vmatmul.mubr.bf16.vlgmr.msra.gmra.mxu1 %v514_v43 }
  0x4b   :  { %543 = vmatpush3.msra.mxu0 %v410_v11  ;;  %550 = vmatprep.mubr.msk.f32.mxu0 %vm667_vm1, %v666_v44 }
  0x4c   :  { %544 = vmatprep.subr.mxu0 %v666_v44 }
  0x4d   :  { %545 = vmatpush3.msra.mxu0 %v409_v12 }
  0x4e   :  { %546 = vmatprep.subr.mxu0 %v666_v44 }
  0x4f   :  { %547 = vmatpush3.msra.mxu0 %v408_v13 }
  0x50   :  { %548 = vmatprep.subr.mxu0 %v666_v44 }
  0x51   :  { %549 = vmatpush3.msra.mxu0 %v407_v14 }
  0xfa   :  { %v236_v45 = vpop.f32.mrf.mxu0  ;;  %v276_v46 = vpop.f32.mrf.mxu1 }
  0xfb   :  { %v277_v53 = vadd.f32 %v276_v46, %v236_v45 }
  0xfc   :  { %v238_v47 = vpop.f32.mrf.mxu0  ;;  %v278_v48 = vpop.f32.mrf.mxu1 }
  0xfe   :  { %v239_v49 = vpop.f32.mrf.mxu0  ;;  %v279_v50 = vpop.f32.mrf.mxu1 }
 0x100   :  { %v240_v51 = vpop.f32.mrf.mxu0  ;;  %v280_v52 = vpop.f32.mrf.mxu1 }
 0x10a   :  { %v316_v54 = vpop.f32.mrf.mxu0  ;;  %v356_v56 = vpop.f32.mrf.mxu1 }
 0x10b   :  { %v317_v55 = vadd.f32 %v316_v54, %v277_v53 }
 0x10c   :  { %v318_v58 = vpop.f32.mrf.mxu0  ;;  %v358_v60 = vpop.f32.mrf.mxu1 }
 0x10d   :  { %v357_v59 = vadd.f32 %v356_v56, %v317_v55 }
 0x10e   :  { %v319_v61 = vpop.f32.mrf.mxu0  ;;  %v359_v63 = vpop.f32.mrf.mxu1 }
 0x10f   :  { %v362_v62 = vadd.f32 %v357_v59, %v73_v57 }
 0x110   :  { %v320_v0 = vpop.f32.mrf.mxu0  ;;  %v360_v1 = vpop.f32.mrf.mxu1 }
 0x111   :  { %364 = vst.msk [vmem:[#allocation2] sm:$0xff] %vm71_vm0, %v362_v62 }
 0x118   :  { %v368_v3 = vld [vmem:[#allocation2] sm:$0xff] }
 0x119   :  { %v376_v4 = vadd.f32 %v532_v2, %v368_v3 }
 0x11b   :  { %v377_v5 = vsel %vm71_vm0, %v376_v4, 0.0 }
 0x11c   :  { %378 = vadd.xlane.f32.xlu0 %v377_v5 }
 0x1a5   :  { %v379_v6 = vpop.xlane.xlu0 %378 }
 0x1a6   :  { %v381_v7 = vmul.f32 0.03125, %v379_v6 }
 0x1a8   :  { %v382_v8 = vsub.f32 %v376_v4, %v381_v7 }
 0x1aa   :  { %v383_v9 = vmul.f32 %v382_v8, %v382_v8 }
 0x1ac   :  { %v384_v10 = vsel %vm71_vm0, %v383_v9, 0.0 }
 0x1ad   :  { %385 = vadd.xlane.f32.xlu0 %v384_v10 }
 0x236   :  { %v386_v15 = vpop.xlane.xlu0 %385 }
 0x237   :  { %v387_v16 = vmul.f32 0.03125, %v386_v15 }
 0x239   :  { %v388_v17 = vadd.f32 1e-05, %v387_v16 }
 0x23b   :  { %571 = vrsqrt.f32 %v388_v17 }
 0x248   :  { %v572_v18 = vpop.eup %571 }
 0x249   :  { %v390_v20 = vmul.f32 %v572_v18, %v382_v8 }
 0x24b   :  { %v398_v22 = vmul.f32 %v533_v19, %v390_v20 }
 0x24d   :  { %v406_v23 = vadd.f32 %v534_v21, %v398_v22 }
 0x24f   :  { %551 = vmatmul.mubr.msk.f32.vlgmr.msra.gmra.mxu0 %vm71_vm0, %v406_v23 }
 0x30f   :  { %v487_v25 = vpop.f32.mrf.mxu0 }
 0x310   :  { %v488_v26 = vadd.f32 %v535_v24, %v487_v25 }
 0x311   :  { %v552_v27 = vpop.f32.mrf.mxu0 }
 0x312   :  { %491 = vst [vmem:[#allocation9] sm:$0xff] %v488_v26 }
 0x313   :  { %644 = shalt.err (!%p641_p5)
}
 0x314   :  { %501 = dma.vmem_to_hbm [thread:$0]  %s499_s25, 128, %s745_s7, [#allocation5]  }
 0x315   :  { %657 = dma.done.wait [#allocation5], 128  }
 0x316   :  { %658 = vsyncadd [#allocation5], 4294967168 }
 0x317   :  { %505 = vsyncpa [#allocation4], 1 }
 0x318   :  { %506 = vsyncpa [#allocation7], 1 }
 0x319   :  { %507 = vsyncpa [#allocation5], 1 }

</bundles_post_ra>
